<compile_context>
chip_gen: v7x
topology: tpu7x:2x2x1
jax: 0.10.0
libtpu: 0.0.40
codegen_flags: <defaults>
</compile_context>

<pallas_src>
import jax
import jax.numpy as jnp
from jax.experimental import pallas as pl
from jax.experimental.pallas import tpu as pltpu


# ----------------------------- Pallas kernel --------------------------------

def _fp_fc_kernel(x_ref, w1_ref, w2_ref, b2_ref, o_ref):
    # Grid axis j walks the 512-wide hidden dim in tiles of `th`.
    #   x_ref : (Bp, Din)  bf16, resident (same block every step)
    #   w1_ref: (Din, th)  bf16, hidden-column tile of the first linear
    #   w2_ref: (th, Dp)   bf16, hidden-row tile of the second linear
    #   b2_ref: (1, Dp)    f32,  folded bias b2 + b1 @ w2 (lane-padded), resident
    #   o_ref : (Bp, Dp)   f32,  resident accumulator / output (lane-padded)
    j = pl.program_id(0)

    @pl.when(j == 0)
    def _():
        # Initialize the accumulator with the (folded) second-layer bias.
        o_ref[...] = jnp.broadcast_to(b2_ref[...], o_ref.shape)

    # First linear on this hidden tile (bias folded into b2_eff):
    # (Bp, Din) @ (Din, th) -> f32, native bf16 MXU pass.
    h = jnp.dot(x_ref[...], w1_ref[...], preferred_element_type=jnp.float32)

    # TODO(synk): nn.Dropout is treated as eval-mode identity (no stochastic
    # mask / scaling applied inside the kernel).

    # Partial contraction of the second linear over this hidden tile.
    o_ref[...] += jnp.dot(h.astype(jnp.bfloat16), w2_ref[...],
                          preferred_element_type=jnp.float32)


# ------------------------------- wrapper -------------------------------------

def fp_fc_forward(x, params, *, dim_out, th=256):
    """x: (B, Din) f32; params: kernel-ready dict from prepare_params()."""
    B, Din = x.shape
    w1, w2, b2 = params['w1'], params['w2'], params['b2']
    H = w1.shape[1]
    Dp = w2.shape[1]
    assert H % th == 0, "hidden dim (512) must be a multiple of the tile width"

    # Pad batch up to a sublane multiple (8) -> unmasked stores / clean vregs.
    Bp = 8 * pl.cdiv(B, 8)
    xp = x if Bp == B else jnp.pad(x, ((0, Bp - B), (0, 0)))
    xp = xp.astype(jnp.bfloat16)

    out = pl.pallas_call(
        _fp_fc_kernel,
        out_shape=jax.ShapeDtypeStruct((Bp, Dp), jnp.float32),
        grid=(H // th,),
        in_specs=[
            pl.BlockSpec((Bp, Din), lambda j: (0, 0)),   # x, resident
            pl.BlockSpec((Din, th), lambda j: (0, j)),   # W1 column tile
            pl.BlockSpec((th, Dp), lambda j: (j, 0)),    # W2 row tile
            pl.BlockSpec((1, Dp), lambda j: (0, 0)),     # b2_eff, resident
        ],
        out_specs=pl.BlockSpec((Bp, Dp), lambda j: (0, 0)),
        compiler_params=pltpu.CompilerParams(
            dimension_semantics=("arbitrary",)),         # reduction axis
    )(xp, w1, w2, b2)

    return out[:B, :dim_out]


# ------------------------------ parameters -----------------------------------

def init_fp_fc(key, dim_in, dim_out, hidden=512):
    """Raw f32 params matching PyTorch nn.Linear default init:
    U(-1/sqrt(fan_in), 1/sqrt(fan_in)) for both weight and bias."""
    k1, k2, k3, k4 = jax.random.split(key, 4)
    b1_bound = 1.0 / (dim_in ** 0.5)
    b2_bound = 1.0 / (hidden ** 0.5)
    return {
        'w1': jax.random.uniform(k1, (dim_in, hidden), jnp.float32,
                                 -b1_bound, b1_bound),
        'b1': jax.random.uniform(k2, (1, hidden), jnp.float32,
                                 -b1_bound, b1_bound),
        'w2': jax.random.uniform(k3, (hidden, dim_out), jnp.float32,
                                 -b2_bound, b2_bound),
        'b2': jax.random.uniform(k4, (1, dim_out), jnp.float32,
                                 -b2_bound, b2_bound),
    }


def prepare_params(raw, *, lane=128):
    """One-time (eval-mode) preprocessing: fold b1 through W2, pad the output
    feature dim to a lane multiple, and cast weights to bf16."""
    w1, b1, w2, b2 = raw['w1'], raw['b1'], raw['w2'], raw['b2']
    dout = w2.shape[1]
    dp = lane * pl.cdiv(dout, lane)

    # Eval-mode fold: (x@w1 + b1)@w2 + b2 == x@w1@w2 + (b2 + b1@w2).
    b2_eff = b2 + b1 @ w2                       # (1, Dout), f32

    if dp != dout:
        w2 = jnp.pad(w2, ((0, 0), (0, dp - dout)))
        b2_eff = jnp.pad(b2_eff, ((0, 0), (0, dp - dout)))

    return {
        'w1': w1.astype(jnp.bfloat16),          # (Din, 512)
        'w2': w2.astype(jnp.bfloat16),          # (512, Dp)
        'b2': b2_eff.astype(jnp.float32),       # (1, Dp)
    }


# --------------------------------- main ---------------------------------------

if __name__ == "__main__":
    key = jax.random.PRNGKey(0)
    kp, kx = jax.random.split(key)

    B, DIM_IN, DIM_OUT = 2, 1024, 96            # shapes fp_FC is used with
    raw = init_fp_fc(kp, DIM_IN, DIM_OUT)
    params = prepare_params(raw)
    x = jax.random.normal(kx, (B, DIM_IN), jnp.float32)

    fwd = jax.jit(fp_fc_forward, static_argnames=("dim_out", "th"))
    out = fwd(x, params, dim_out=DIM_OUT)
    jax.block_until_ready(out)

    assert out.shape == (B, DIM_OUT) and out.dtype == jnp.float32

    # Semantic reference (full f32, dropout = identity in eval mode); loose
    # tolerance accounts for the bf16 weight quantization.
    ref_f32 = (x @ raw['w1'] + raw['b1']) @ raw['w2'] + raw['b2']
    assert jnp.allclose(out, ref_f32, rtol=2e-2, atol=2e-2)

    # Precision-matched reference (bf16 weights, f32 accumulation, folded bias).
    b2_eff = raw['b2'] + raw['b1'] @ raw['w2']
    h_ref = jnp.dot(x.astype(jnp.bfloat16), raw['w1'].astype(jnp.bfloat16),
                    preferred_element_type=jnp.float32)
    ref_bf = jnp.dot(h_ref.astype(jnp.bfloat16), raw['w2'].astype(jnp.bfloat16),
                     preferred_element_type=jnp.float32) + b2_eff
    assert jnp.allclose(out, ref_bf, rtol=1e-3, atol=1e-3)

    print("KERNEL_OK")
</pallas_src>

<mosaic_0001>
module attributes {stable_mosaic.version = 11 : i64} {
  func.func @_fp_fc_kernel(%arg0: i32, %arg1: memref<8x1024xbf16, #tpu.memory_space<vmem>>, %arg2: memref<1024x256xbf16, #tpu.memory_space<vmem>>, %arg3: memref<256x128xbf16, #tpu.memory_space<vmem>>, %arg4: memref<1x128xf32, #tpu.memory_space<vmem>>, %arg5: memref<8x128xf32, #tpu.memory_space<vmem>>) attributes {dimension_semantics = [#tpu.dimension_semantics<arbitrary>], iteration_bounds = array<i64: 2>, scalar_prefetch = 0 : i64, scratch_operands = 0 : i64, tpu.core_type = #tpu.core_type<tc>, window_params = [{pipeline_mode = #tpu.pipeline_mode<synchronous>, transform_indices = @transform_0, window_bounds = array<i64: 8, 1024>}, {transform_indices = @transform_1, window_bounds = array<i64: 1024, 256>}, {transform_indices = @transform_2, window_bounds = array<i64: 256, 128>}, {pipeline_mode = #tpu.pipeline_mode<synchronous>, transform_indices = @transform_3, window_bounds = array<i64: 1, 128>}, {pipeline_mode = #tpu.pipeline_mode<synchronous>, transform_indices = @transform_4, window_bounds = array<i64: 8, 128>}]} {
    %c0_i32 = arith.constant 0 : i32
    %0 = arith.cmpi eq, %arg0, %c0_i32 : i32
    %1 = arith.extui %0 : i1 to i32
    %c0_i32_0 = arith.constant 0 : i32
    %2 = arith.cmpi ne, %1, %c0_i32_0 : i32
    scf.if %2 {
      %c0_11 = arith.constant 0 : index
      %c0_12 = arith.constant 0 : index
      %12 = vector.load %arg4[%c0_11, %c0_12] : memref<1x128xf32, #tpu.memory_space<vmem>>, vector<1x128xf32>
      %13 = vector.shape_cast %12 : vector<1x128xf32> to vector<1x128xf32>
      %14 = vector.broadcast %13 : vector<1x128xf32> to vector<8x128xf32>
      %c0_13 = arith.constant 0 : index
      %c0_14 = arith.constant 0 : index
      %15 = vector.load %arg5[%c0_13, %c0_14] : memref<8x128xf32, #tpu.memory_space<vmem>>, vector<8x128xf32>
      tpu.vector_store %arg5[%c0_13, %c0_14], %14 {strides = array<i32>} : memref<8x128xf32, #tpu.memory_space<vmem>>, vector<8x128xf32>,
    } else {
    }
    %c0 = arith.constant 0 : index
    %c0_1 = arith.constant 0 : index
    %3 = vector.load %arg1[%c0, %c0_1] : memref<8x1024xbf16, #tpu.memory_space<vmem>>, vector<8x1024xbf16>
    %c0_2 = arith.constant 0 : index
    %c0_3 = arith.constant 0 : index
    %4 = vector.load %arg2[%c0_2, %c0_3] : memref<1024x256xbf16, #tpu.memory_space<vmem>>, vector<1024x256xbf16>
    %cst = arith.constant dense<0.000000e+00> : vector<8x256xf32>
    %5 = tpu.matmul %3, %4, %cst {dimension_numbers = #tpu.dot_dimension_numbers<[1], [0], [0], [1], [0, 0, 1, 1], [], []>} : vector<8x1024xbf16>, vector<1024x256xbf16>, vector<8x256xf32> -> vector<8x256xf32>
    %c0_4 = arith.constant 0 : index
    %c0_5 = arith.constant 0 : index
    %6 = vector.load %arg5[%c0_4, %c0_5] : memref<8x128xf32, #tpu.memory_space<vmem>>, vector<8x128xf32>
    %7 = arith.truncf %5 : vector<8x256xf32> to vector<8x256xbf16>
    %c0_6 = arith.constant 0 : index
    %c0_7 = arith.constant 0 : index
    %8 = vector.load %arg3[%c0_6, %c0_7] : memref<256x128xbf16, #tpu.memory_space<vmem>>, vector<256x128xbf16>
    %cst_8 = arith.constant dense<0.000000e+00> : vector<8x128xf32>
    %9 = tpu.matmul %7, %8, %cst_8 {dimension_numbers = #tpu.dot_dimension_numbers<[1], [0], [0], [1], [0, 0, 1, 1], [], []>} : vector<8x256xbf16>, vector<256x128xbf16>, vector<8x128xf32> -> vector<8x128xf32>
    %10 = arith.addf %6, %9 : vector<8x128xf32>
    %c0_9 = arith.constant 0 : index
    %c0_10 = arith.constant 0 : index
    %11 = vector.load %arg5[%c0_9, %c0_10] : memref<8x128xf32, #tpu.memory_space<vmem>>, vector<8x128xf32>
    tpu.vector_store %arg5[%c0_9, %c0_10], %10 {strides = array<i32>} : memref<8x128xf32, #tpu.memory_space<vmem>>, vector<8x128xf32>,
    return
  }
  func.func @transform_0(%arg0: i32) -> (i32, i32) {
    %c0_i32 = arith.constant 0 : i32
    %c0_i32_0 = arith.constant 0 : i32
    %c0_i32_1 = arith.constant 0 : i32
    return %c0_i32, %c0_i32_0 : i32, i32
  }
  func.func @transform_1(%arg0: i32) -> (i32, i32) {
    %c0_i32 = arith.constant 0 : i32
    %c0_i32_0 = arith.constant 0 : i32
    return %c0_i32, %arg0 : i32, i32
  }
  func.func @transform_2(%arg0: i32) -> (i32, i32) {
    %c0_i32 = arith.constant 0 : i32
    %c0_i32_0 = arith.constant 0 : i32
    return %arg0, %c0_i32 : i32, i32
  }
  func.func @transform_3(%arg0: i32) -> (i32, i32) {
    %c0_i32 = arith.constant 0 : i32
    %c0_i32_0 = arith.constant 0 : i32
    %c0_i32_1 = arith.constant 0 : i32
    return %c0_i32, %c0_i32_0 : i32, i32
  }
  func.func @transform_4(%arg0: i32) -> (i32, i32) {
    %c0_i32 = arith.constant 0 : i32
    %c0_i32_0 = arith.constant 0 : i32
    %c0_i32_1 = arith.constant 0 : i32
    return %c0_i32, %c0_i32_0 : i32, i32
  }
}

</mosaic_0001>

<bundles_post_ra>
// kernel: fp_fc_forward.1
= control target key start
LH: loop header
LB: loop body
LE: loop exit
PB: predicated region body
PF: predicated region fallthrough
CT: control target
= control target key end

     0   :  { %9 = vsyncpa [#allocation3], 0  ;;  %s2390_s0 = inlined_call_operand.vmem [shape: bf16[8,1024], index: 0, kind: input, shape index: {}]   ;;  %s2391_s1 = inlined_call_operand.hbm [shape: bf16[1024,512], index: 1, kind: input, shape index: {}]   ;;  %s2392_s2 = inlined_call_operand.hbm [shape: bf16[512,128], index: 2, kind: input, shape index: {}]   ;;  %s2393_s3 = inlined_call_operand.vmem [shape: f32[1,128], index: 3, kind: input, shape index: {}]   ;;  %s2394_s4 = inlined_call_operand.vmem [shape: f32[8,128], index: 4, kind: output, shape index: {}]  }
   0x1   :  { %11 = vsyncpa [#allocation3 + $0x1], 0 }
   0x2   :  { %12 = vsyncpa [#allocation5], 0 }
   0x3   :  { %14 = vsyncpa [#allocation5 + $0x1], 0  ;;  %s2056_s15 = smov 0   ;;  %s2058_s16 = smov 0  }
   0x4   :  { %s2060_s17 = smov 0   ;;  %s2062_s18 = smov 0  }
   0x5 LB: > { %s1457_s19 = sadd.s32 4294967295, %s2022_s18   ;;  %s2076_s20 = sadd.s32 1, %s2022_s18   ;;  %s2022_s18 = sphi %s2062_s18, %s2403_s18   ;;  %s2018_s17 = sphi %s2060_s17, %s2402_s17   ;;  %s2014_s16 = sphi %s2058_s16, %s2401_s16   ;;  %s2010_s15 = sphi %s2056_s15, %s2400_s15  }
   0x6   : > { %s45_s21 = ssub.s32 %s2022_s18, %s2076_s20  ;;  %s48_s22 = sadd.s32 1, %s2018_s17 }
   0x7   : > { %p46_p0 = scmp.eq.s32.totalorder %s45_s21, 0  ;;  %p55_p1 = scmp.ne.s32.totalorder %s2018_s17, %s2014_s16 }
   0x8   : > { %p56_p2 = scmp.eq.s32.totalorder %s2022_s18, 0  ;;  %p61_p3 = scmp.ne.s32.totalorder %s2014_s16, %s2010_s15 }
   0x9   : > { %s2086_s23 = scalar_select %p46_p0, %s2018_s17, %s48_s22  }
   0xa   : > { %p57_p4 = por %p56_p2, %p55_p1  ;;  %p62_p5 = scmp.eq.s32.totalorder %s1457_s19, 0 }
   0xb   : > { %p1670_p6 = scmp.lt.s32.totalorder %s2022_s18, 2  ;;  %s2096_s25 = sand.u32 1, %s2018_s17  }
   0xc   : > { %p2091_p7 = por %p62_p5, %p61_p3  ;;  %s1460_s26 = sshll.u32 %s2096_s25, 10 }
   0xd   : > { %s1625_s27 = sshll.u32 %s2022_s18, 7  ;;  %s163_s5 = scalar_lea.vmem [#allocation2], %s1460_s26 }
   0xe   : > { %s2396_s24 = scalar_select %p2091_p7, 1, 0 }
   0xf   : > { %s2103_s30 = scalar_lea.hbm %s2391_s1, %s1625_s27  ;;  %s170_s6 = sshll.u32 %s163_s5, 4  ;;  %s2105_s6 = int_to_ptr.vmem [resolvable:$true] %s170_s6 }
  0x10   : > { %p2107_p8 = pnand %p1670_p6, %p57_p4  ;;  %s160_s8 = scalar_lea.sflag [#allocation3], %s2096_s25 }
  0x11   : > { %s1924_s9 = scalar_lea.hbm %s2103_s30, 16384  ;;  %s1929_s12 = scalar_lea.hbm %s2391_s1, 32768 }
  0x12   : > { %p1925_p9 = scmp.ne.s32.totalorder %s2103_s30, %s1924_s9  ;;  %p1926_p10 = pneg %p2107_p8 }
  0x13   : > { %p1930_p13 = scmp.lt.u32.totalorder %s2103_s30, %s2391_s1  ;;  %p1931_p0 = scmp.lt.u32.totalorder %s1929_s12, %s1924_s9 }
  0x14   : > { %p1927_p11 = pnand %p1926_p10, %p1925_p9  ;;  %p1933_p2 = scmp.lt.u32.totalorder %s1924_s9, %s2103_s30 }
  0x15   : > { %p1932_p1 = por %p1931_p0, %p1930_p13 }
  0x16   : > { %p1928_p12 = pneg %p1927_p11 }
  0x17   : > { %p1934_p3 = por %p1933_p2, %p1932_p1 }
  0x19   : > { %p1935_p4 = pnand %p1934_p3, %p1928_p12 }
  0x1b   : > { %1938 = shalt.err (!%p1935_p4)
}
  0x1c   : > { %s1939_s15 = scalar_lea.vmem %s2105_s6, 16384  ;;  %s2024_s21 = smov [#allocation2]  }
  0x1d   : > { %p1940_p5 = scmp.ne.s32.totalorder %s2105_s6, %s1939_s15  ;;  %s1944_s22 = sshll.u32 %s2024_s21, 4  ;;  %s1945_s22 = int_to_ptr.vmem [resolvable:$false] %s1944_s22 }
  0x1e   : > { %s1946_s26 = scalar_lea.vmem %s1945_s22, 32768  ;;  %p1947_p11 = scmp.lt.s32.totalorder %s2105_s6, %s1945_s22 }
  0x1f   : > { %p1942_p6 = pnand %p1940_p5, %p1926_p10  ;;  %p1948_p13 = scmp.lt.s32.totalorder %s1946_s26, %s1939_s15 }
  0x21   : > { %p1943_p9 = pneg %p1942_p6  ;;  %p1949_p0 = por %p1948_p13, %p1947_p11 }
  0x23   : > { %p1950_p1 = pnand %p1949_p0, %p1943_p9 }
  0x25   : > { %1953 = shalt.err (!%p1950_p1)
}
  0x26   : > { %s2025_s27 = smov 256   ;;  %s2026_s28 = smov 128  }
  0x27   : > { %s2027_s29 = smov 8   ;;  %p1466_p12 = scmp.ge.s32.totalorder %s2022_s18, 1 }
  0x28   : > { %1666 = dma.hbm_to_vmem [thread:$0]  (!%p2107_p8), %s2103_s30, 16384, %s2105_s6, %s160_s8, %s2025_s27, %s2026_s28, %s2027_s29  }
  0x29   : > { %p199_p2 = scmp.lt.s32.totalorder %s2022_s18, 3  ;;  %s1463_s5 = sshll.u32 %s2096_s25, 7 }
  0x2a   : > { %s1626_s10 = sshll.u32 %s2022_s18, 11  ;;  %s184_s11 = scalar_lea.vmem [#allocation4], %s1463_s5 }
  0x2b   : > { %p2142_p3 = pnand %p1466_p12, %p199_p2  ;;  %s191_s12 = sshll.u32 %s184_s11, 4  ;;  %s2152_s12 = int_to_ptr.vmem [resolvable:$true] %s191_s12 }
  0x2c   : > { %s2150_s15 = scalar_lea.hbm %s2392_s2, %s1626_s10  ;;  %s181_s30 = scalar_lea.sflag [#allocation5], %s2096_s25 }
  0x2d   : > { %s1954_s6 = scalar_lea.hbm %s2150_s15, 2048  ;;  %s1959_s22 = scalar_lea.hbm %s2392_s2, 4096 }
  0x2e   : > { %p1955_p4 = scmp.ne.s32.totalorder %s2150_s15, %s1954_s6  ;;  %p1960_p9 = scmp.lt.u32.totalorder %s2150_s15, %s2392_s2 }
  0x2f   : > { %p1961_p11 = scmp.lt.u32.totalorder %s1959_s22, %s1954_s6  ;;  %p1963_p0 = scmp.lt.u32.totalorder %s1954_s6, %s2150_s15 }
  0x30   : > { %p1957_p5 = pnand %p1955_p4, %p1926_p10 }
  0x31   : > { %p1962_p13 = por %p1961_p11, %p1960_p9 }
  0x32   : > { %p1958_p6 = pneg %p1957_p5 }
  0x33   : > { %p1964_p1 = por %p1963_p0, %p1962_p13 }
  0x35   : > { %p1965_p12 = pnand %p1964_p1, %p1958_p6 }
  0x37   : > { %1968 = shalt.err (!%p1965_p12)
}
  0x38   : > { %s1969_s28 = scalar_lea.vmem %s2152_s12, 2048  ;;  %s2028_s29 = smov [#allocation4]  }
  0x39   : > { %p1970_p2 = scmp.ne.s32.totalorder %s2152_s12, %s1969_s28  ;;  %s1974_s5 = sshll.u32 %s2028_s29, 4  ;;  %s1975_s5 = int_to_ptr.vmem [resolvable:$false] %s1974_s5 }
  0x3a   : > { %s1976_s10 = scalar_lea.vmem %s1975_s5, 4096  ;;  %p1977_p7 = scmp.lt.s32.totalorder %s2152_s12, %s1975_s5 }
  0x3b   : > { %p1972_p4 = pnand %p1970_p2, %p1926_p10  ;;  %p1978_p9 = scmp.lt.s32.totalorder %s1976_s10, %s1969_s28 }
  0x3d   : > { %p1973_p5 = pneg %p1972_p4  ;;  %p1979_p11 = por %p1978_p9, %p1977_p7 }
  0x3f   : > { %p1980_p13 = pnand %p1979_p11, %p1973_p5 }
  0x41   : > { %1983 = shalt.err (!%p1980_p13)
}
  0x42   : > { %s2029_s11 = smov 64   ;;  %s2030_s13 = smov 4  }
  0x43   : > { %1669 = dma.hbm_to_vmem [thread:$0]  (!%p2107_p8), %s2150_s15, 2048, %s2152_s12, %s181_s30, %s2029_s11, %s2029_s11, %s2030_s13  }
  0x44   : > { %203 = sbr.rel (%p2142_p3) target bundleno = 654 (0x28e), region = 36  ;;  %s205_s14 = sand.u32 (!%p2142_p3), 1, %s2014_s16  }
  0x45   : > { %s1467_s6 = sshll.u32 (!%p2142_p3), %s205_s14, 10  ;;  %s206_s8 = scalar_lea.sflag (!%p2142_p3), [#allocation3], %s205_s14 }
  0x46   : > { %s2183_s21 = scalar_lea.vmem (!%p2142_p3), [#allocation2], %s1467_s6  ;;  %p2399_p7 = scmp.ne.s32.totalorder (!%p2142_p3), %s2396_s24, 0 }
  0x4b   : > { %2001 = dma.done.wait (%p2399_p7), %s206_s8, 16384  }
  0x4c   : > { %2003 = vsyncadd (%p2399_p7), %s206_s8, 4294950912  ;;  %s1468_s22 = sshll.u32 %s205_s14, 7  ;;  %s215_s7 = scalar_lea.sflag [#allocation5], %s205_s14 }
  0x4d   : > { %s2189_s25 = scalar_lea.vmem [#allocation4], %s1468_s22 }
  0x4e   : > { %2005 = dma.done.wait (%p2399_p7), %s215_s7, 2048  }
  0x4f   : > { %2007 = vsyncadd (%p2399_p7), %s215_s7, 4294965248  ;;  %p1469_p8 = scmp.ne.s32.totalorder %s1457_s19, 0 }
  0x50   : > { %v1470_v0 = vld [vmem:[%s2393_s3] ss:$0 sm:$0xff] (!%p1469_p8) }
  0x51   : > { %249 = sbr.rel (%p1469_p8) target bundleno = 88 (0x58), region = 48  ;;  %257 = vst [vmem:[%s2394_s4] sm:$0xff] (!%p1469_p8), %v1470_v0 }
  0x58 PF: > { %v1708_v1 = vld [vmem:[%s2183_s21 + $0x4] ss:$8 sps:$4 sm:$0xff]   ;;  %v1712_v3 = vld [vmem:[%s2183_s21] ss:$8 sps:$4 sm:$0xff]   ;;  %v1714_v5 = vld [vmem:[%s2183_s21 + $0x14] ss:$8 sps:$4 sm:$0xff]  }
  0x59   : > { %v1710_v2 = vld [vmem:[%s2183_s21 + $0x204] ss:$8 sps:$4 sm:$0xff]   ;;  %1058 = vmatprep.subr.bf16.mxu1 %v1708_v1  ;;  %v1713_v4 = vld [vmem:[%s2183_s21 + $0x200] ss:$8 sps:$4 sm:$0xff]   ;;  %v1716_v6 = vld [vmem:[%s2183_s21 + $0x214] ss:$8 sps:$4 sm:$0xff]  }
  0x5a   : > { %1140 = vmatprep.subr.bf16.mxu0 %v1710_v2  ;;  %1059 = vmatpush1.bf16.msra.mxu1 %v1712_v3  ;;  %v1718_v7 = vld [vmem:[%s2183_s21 + $0x10] ss:$8 sps:$4 sm:$0xff]   ;;  %v1720_v9 = vld [vmem:[%s2183_s21 + $0x24] ss:$8 sps:$4 sm:$0xff]   ;;  %v1724_v11 = vld [vmem:[%s2183_s21 + $0x20] ss:$8 sps:$4 sm:$0xff]  }
  0x5b   : > { %1141 = vmatpush1.bf16.msra.mxu0 %v1713_v4  ;;  %1060 = vmatprep.subr.bf16.mxu1 %v1714_v5  ;;  %v1719_v8 = vld [vmem:[%s2183_s21 + $0x210] ss:$8 sps:$4 sm:$0xff]   ;;  %v1722_v10 = vld [vmem:[%s2183_s21 + $0x224] ss:$8 sps:$4 sm:$0xff]   ;;  %v1725_v12 = vld [vmem:[%s2183_s21 + $0x220] ss:$8 sps:$4 sm:$0xff]  }
  0x5c   : > { %1142 = vmatprep.subr.bf16.mxu0 %v1716_v6  ;;  %v1726_v13 = vld [vmem:[%s2183_s21 + $0x34] ss:$8 sps:$4 sm:$0xff]   ;;  %v1730_v15 = vld [vmem:[%s2183_s21 + $0x30] ss:$8 sps:$4 sm:$0xff]   ;;  %v1732_v17 = vld [vmem:[%s2183_s21 + $0x44] ss:$8 sps:$4 sm:$0xff]  }
  0x5d   : > { %v1728_v14 = vld [vmem:[%s2183_s21 + $0x234] ss:$8 sps:$4 sm:$0xff]   ;;  %v1731_v16 = vld [vmem:[%s2183_s21 + $0x230] ss:$8 sps:$4 sm:$0xff]   ;;  %v1734_v18 = vld [vmem:[%s2183_s21 + $0x244] ss:$8 sps:$4 sm:$0xff]  }
  0x5e   : > { %1061 = vmatpush1.bf16.msra.mxu1 %v1718_v7  ;;  %v1736_v19 = vld [vmem:[%s2183_s21 + $0x40] ss:$8 sps:$4 sm:$0xff]   ;;  %v1738_v21 = vld [vmem:[%s2183_s21 + $0x54] ss:$8 sps:$4 sm:$0xff]   ;;  %v1742_v23 = vld [vmem:[%s2183_s21 + $0x50] ss:$8 sps:$4 sm:$0xff]  }
  0x5f   : > { %1143 = vmatpush1.bf16.msra.mxu0 %v1719_v8  ;;  %1062 = vmatprep.subr.bf16.mxu1 %v1720_v9  ;;  %v1737_v20 = vld [vmem:[%s2183_s21 + $0x240] ss:$8 sps:$4 sm:$0xff]   ;;  %v1740_v22 = vld [vmem:[%s2183_s21 + $0x254] ss:$8 sps:$4 sm:$0xff]   ;;  %v1743_v24 = vld [vmem:[%s2183_s21 + $0x250] ss:$8 sps:$4 sm:$0xff]  }
  0x60   : > { %1144 = vmatprep.subr.bf16.mxu0 %v1722_v10  ;;  %v1744_v25 = vld [vmem:[%s2183_s21 + $0x64] ss:$8 sps:$4 sm:$0xff]   ;;  %v1748_v27 = vld [vmem:[%s2183_s21 + $0x60] ss:$8 sps:$4 sm:$0xff]   ;;  %v1750_v29 = vld [vmem:[%s2183_s21 + $0x74] ss:$8 sps:$4 sm:$0xff]  }
  0x61   : > { %v1746_v26 = vld [vmem:[%s2183_s21 + $0x264] ss:$8 sps:$4 sm:$0xff]   ;;  %v1749_v28 = vld [vmem:[%s2183_s21 + $0x260] ss:$8 sps:$4 sm:$0xff]   ;;  %v1752_v30 = vld [vmem:[%s2183_s21 + $0x274] ss:$8 sps:$4 sm:$0xff]  }
  0x62   : > { %1063 = vmatpush1.bf16.msra.mxu1 %v1724_v11  ;;  %v1754_v31 = vld [vmem:[%s2183_s21 + $0x70] ss:$8 sps:$4 sm:$0xff]   ;;  %v1756_v33 = vld [vmem:[%s2183_s21 + $0x84] ss:$8 sps:$4 sm:$0xff]   ;;  %v1760_v35 = vld [vmem:[%s2183_s21 + $0x80] ss:$8 sps:$4 sm:$0xff]  }
  0x63   : > { %1145 = vmatpush1.bf16.msra.mxu0 %v1725_v12  ;;  %1064 = vmatprep.subr.bf16.mxu1 %v1726_v13  ;;  %v1755_v32 = vld [vmem:[%s2183_s21 + $0x270] ss:$8 sps:$4 sm:$0xff]   ;;  %v1758_v34 = vld [vmem:[%s2183_s21 + $0x284] ss:$8 sps:$4 sm:$0xff]   ;;  %v1761_v36 = vld [vmem:[%s2183_s21 + $0x280] ss:$8 sps:$4 sm:$0xff]  }
  0x64   : > { %1146 = vmatprep.subr.bf16.mxu0 %v1728_v14  ;;  %v1762_v37 = vld [vmem:[%s2183_s21 + $0x94] ss:$8 sps:$4 sm:$0xff]   ;;  %v1766_v39 = vld [vmem:[%s2183_s21 + $0x90] ss:$8 sps:$4 sm:$0xff]   ;;  %v1768_v41 = vld [vmem:[%s2183_s21 + $0xa4] ss:$8 sps:$4 sm:$0xff]  }
  0x65   : > { %v1764_v38 = vld [vmem:[%s2183_s21 + $0x294] ss:$8 sps:$4 sm:$0xff]   ;;  %v1767_v40 = vld [vmem:[%s2183_s21 + $0x290] ss:$8 sps:$4 sm:$0xff]   ;;  %v1770_v42 = vld [vmem:[%s2183_s21 + $0x2a4] ss:$8 sps:$4 sm:$0xff]  }
  0x66   : > { %1065 = vmatpush1.bf16.msra.mxu1 %v1730_v15  ;;  %v1772_v43 = vld [vmem:[%s2183_s21 + $0xa0] ss:$8 sps:$4 sm:$0xff]   ;;  %v1774_v45 = vld [vmem:[%s2183_s21 + $0xb4] ss:$8 sps:$4 sm:$0xff]   ;;  %v1778_v48 = vld [vmem:[%s2183_s21 + $0xb0] ss:$8 sps:$4 sm:$0xff]  }
  0x67   : > { %1147 = vmatpush1.bf16.msra.mxu0 %v1731_v16  ;;  %1066 = vmatprep.subr.bf16.mxu1 %v1732_v17  ;;  %v1773_v44 = vld [vmem:[%s2183_s21 + $0x2a0] ss:$8 sps:$4 sm:$0xff]   ;;  %v1776_v46 = vld [vmem:[%s2183_s21 + $0x2b4] ss:$8 sps:$4 sm:$0xff]   ;;  %v1779_v50 = vld [vmem:[%s2183_s21 + $0x2b0] ss:$8 sps:$4 sm:$0xff]  }
  0x68   : > { %1148 = vmatprep.subr.bf16.mxu0 %v1734_v18  ;;  %v258_v47 = vld [vmem:[%s2390_s0] sm:$0xff]  ;;  %v260_v51 = vld [vmem:[%s2390_s0 + $0x10] sm:$0xff] }
  0x69   : > { %v1472_v49 = vcombine.high %v258_v47, %v258_v47  ;;  %v1780_v52 = vld [vmem:[%s2183_s21 + $0xc4] ss:$8 sps:$4 sm:$0xff]   ;;  %v1476_v54 = vcombine.high %v260_v51, %v260_v51  ;;  %v1784_v55 = vld [vmem:[%s2183_s21 + $0xc0] ss:$8 sps:$4 sm:$0xff]   ;;  %v1786_v57 = vld [vmem:[%s2183_s21 + $0xd4] ss:$8 sps:$4 sm:$0xff]   ;;  %v1471_v7 = vcombine.low %v258_v47, %v258_v47  ;;  %v1475_v8 = vcombine.low %v260_v51, %v260_v51 }
  0x6a   : > { %1067 = vmatpush1.bf16.msra.mxu1 %v1736_v19  ;;  %v1782_v53 = vld [vmem:[%s2183_s21 + $0x2c4] ss:$8 sps:$4 sm:$0xff]   ;;  %v1785_v56 = vld [vmem:[%s2183_s21 + $0x2c0] ss:$8 sps:$4 sm:$0xff]   ;;  %v1788_v58 = vld [vmem:[%s2183_s21 + $0x2d4] ss:$8 sps:$4 sm:$0xff]  }
  0x6b   : > { %1149 = vmatpush1.bf16.msra.mxu0 %v1737_v20  ;;  %1068 = vmatprep.subr.bf16.mxu1 %v1738_v21  ;;  %v1790_v59 = vld [vmem:[%s2183_s21 + $0xd0] ss:$8 sps:$4 sm:$0xff]   ;;  %v1792_v61 = vld [vmem:[%s2183_s21 + $0xe4] ss:$8 sps:$4 sm:$0xff]   ;;  %v1796_v63 = vld [vmem:[%s2183_s21 + $0xe0] ss:$8 sps:$4 sm:$0xff]  }
  0x6c   : > { %1150 = vmatprep.subr.bf16.mxu0 %v1740_v22  ;;  %1090 = vmatprep.mubr.bf16.mxu1 %v1472_v49  ;;  %v1791_v60 = vld [vmem:[%s2183_s21 + $0x2d0] ss:$8 sps:$4 sm:$0xff]   ;;  %v1794_v62 = vld [vmem:[%s2183_s21 + $0x2e4] ss:$8 sps:$4 sm:$0xff]   ;;  %v1797_v0 = vld [vmem:[%s2183_s21 + $0x2e0] ss:$8 sps:$4 sm:$0xff]  }
  0x6d   : > { %1172 = vmatprep.mubr.bf16.mxu0 %v1476_v54  ;;  %v1798_v1 = vld [vmem:[%s2183_s21 + $0xf4] ss:$8 sps:$4 sm:$0xff]   ;;  %v1802_v3 = vld [vmem:[%s2183_s21 + $0xf0] ss:$8 sps:$4 sm:$0xff]   ;;  %v1808_v5 = vld [vmem:[%s2183_s21 + $0x104] ss:$8 sps:$4 sm:$0xff]  }
  0x6e   : > { %1069 = vmatpush1.bf16.msra.mxu1 %v1742_v23  ;;  %v1800_v2 = vld [vmem:[%s2183_s21 + $0x2f4] ss:$8 sps:$4 sm:$0xff]   ;;  %v1803_v4 = vld [vmem:[%s2183_s21 + $0x2f0] ss:$8 sps:$4 sm:$0xff]   ;;  %v1813_v6 = vld [vmem:[%s2183_s21 + $0x304] ss:$8 sps:$4 sm:$0xff]  }
  0x6f   : > { %1151 = vmatpush1.bf16.msra.mxu0 %v1743_v24  ;;  %1070 = vmatprep.subr.bf16.mxu1 %v1744_v25  ;;  %v1806_v9 = vld [vmem:[%s2183_s21 + $0x100] ss:$8 sps:$4 sm:$0xff]   ;;  %v1816_v11 = vld [vmem:[%s2183_s21 + $0x114] ss:$8 sps:$4 sm:$0xff]   ;;  %v1814_v13 = vld [vmem:[%s2183_s21 + $0x110] ss:$8 sps:$4 sm:$0xff]  }
  0x70   : > { %1152 = vmatprep.subr.bf16.mxu0 %v1746_v26  ;;  %v1811_v10 = vld [vmem:[%s2183_s21 + $0x300] ss:$8 sps:$4 sm:$0xff]   ;;  %v1819_v12 = vld [vmem:[%s2183_s21 + $0x314] ss:$8 sps:$4 sm:$0xff]   ;;  %v1817_v14 = vld [vmem:[%s2183_s21 + $0x310] ss:$8 sps:$4 sm:$0xff]  }
  0x71   : > { %v1822_v15 = vld [vmem:[%s2183_s21 + $0x124] ss:$8 sps:$4 sm:$0xff]   ;;  %v1820_v17 = vld [vmem:[%s2183_s21 + $0x120] ss:$8 sps:$4 sm:$0xff]   ;;  %v1828_v19 = vld [vmem:[%s2183_s21 + $0x134] ss:$8 sps:$4 sm:$0xff]  }
  0x72   : > { %1071 = vmatpush1.bf16.msra.mxu1 %v1748_v27  ;;  %v1825_v16 = vld [vmem:[%s2183_s21 + $0x324] ss:$8 sps:$4 sm:$0xff]   ;;  %v1823_v18 = vld [vmem:[%s2183_s21 + $0x320] ss:$8 sps:$4 sm:$0xff]   ;;  %v1831_v20 = vld [vmem:[%s2183_s21 + $0x334] ss:$8 sps:$4 sm:$0xff]  }
  0x73   : > { %1153 = vmatpush1.bf16.msra.mxu0 %v1749_v28  ;;  %1072 = vmatprep.subr.bf16.mxu1 %v1750_v29  ;;  %v1826_v21 = vld [vmem:[%s2183_s21 + $0x130] ss:$8 sps:$4 sm:$0xff]   ;;  %v1834_v23 = vld [vmem:[%s2183_s21 + $0x144] ss:$8 sps:$4 sm:$0xff]   ;;  %v1832_v25 = vld [vmem:[%s2183_s21 + $0x140] ss:$8 sps:$4 sm:$0xff]  }
  0x74   : > { %1154 = vmatprep.subr.bf16.mxu0 %v1752_v30  ;;  %v1829_v22 = vld [vmem:[%s2183_s21 + $0x330] ss:$8 sps:$4 sm:$0xff]   ;;  %v1837_v24 = vld [vmem:[%s2183_s21 + $0x344] ss:$8 sps:$4 sm:$0xff]   ;;  %v1835_v26 = vld [vmem:[%s2183_s21 + $0x340] ss:$8 sps:$4 sm:$0xff]  }
  0x75   : > { %v1840_v27 = vld [vmem:[%s2183_s21 + $0x154] ss:$8 sps:$4 sm:$0xff]   ;;  %v1838_v29 = vld [vmem:[%s2183_s21 + $0x150] ss:$8 sps:$4 sm:$0xff]   ;;  %v1870_v51 = vld [vmem:[%s2183_s21 + $0x1a4] ss:$8 sps:$4 sm:$0xff]  }
  0x76   : > { %1073 = vmatpush1.bf16.msra.mxu1 %v1754_v31  ;;  %v1843_v28 = vld [vmem:[%s2183_s21 + $0x354] ss:$8 sps:$4 sm:$0xff]   ;;  %v1841_v30 = vld [vmem:[%s2183_s21 + $0x350] ss:$8 sps:$4 sm:$0xff]   ;;  %v1846_v31 = vld [vmem:[%s2183_s21 + $0x164] ss:$8 sps:$4 sm:$0xff]  }
  0x77   : > { %1155 = vmatpush1.bf16.msra.mxu0 %v1755_v32  ;;  %1074 = vmatprep.subr.bf16.mxu1 %v1756_v33  ;;  %v1849_v32 = vld [vmem:[%s2183_s21 + $0x364] ss:$8 sps:$4 sm:$0xff]   ;;  %v1844_v33 = vld [vmem:[%s2183_s21 + $0x160] ss:$8 sps:$4 sm:$0xff]   ;;  %v1864_v47 = vld [vmem:[%s2183_s21 + $0x194] ss:$8 sps:$4 sm:$0xff]  }
  0x78   : > { %1156 = vmatprep.subr.bf16.mxu0 %v1758_v34  ;;  %v2303_v34 = vld [vmem:[%s2390_s0 + $0x8] sm:$0xff]  ;;  %v1862_v49 = vld [vmem:[%s2183_s21 + $0x190] ss:$8 sps:$4 sm:$0xff]  }
  0x79   : > { %v1871_v54 = vld [vmem:[%s2183_s21 + $0x3a0] ss:$8 sps:$4 sm:$0xff]  }
  0x7a   : > { %1075 = vmatpush1.bf16.msra.mxu1 %v1760_v35  ;;  %v2308_v35 = vld [vmem:[%s2390_s0 + $0x18] sm:$0xff] }
  0x7b   : > { %1157 = vmatpush1.bf16.msra.mxu0 %v1761_v36  ;;  %1076 = vmatprep.subr.bf16.mxu1 %v1762_v37  ;;  %v1847_v36 = vld [vmem:[%s2183_s21 + $0x360] ss:$8 sps:$4 sm:$0xff]   ;;  %v1474_v37 = vcombine.high %v2303_v34, %v2303_v34 }
  0x7c   : > { %1158 = vmatprep.subr.bf16.mxu0 %v1764_v38  ;;  %v1478_v38 = vcombine.high %v2308_v35, %v2308_v35 }
  0x7e   : > { %1077 = vmatpush1.bf16.msra.mxu1 %v1766_v39  ;;  %v1852_v39 = vld [vmem:[%s2183_s21 + $0x174] ss:$8 sps:$4 sm:$0xff]  }
  0x7f   : > { %1159 = vmatpush1.bf16.msra.mxu0 %v1767_v40  ;;  %1078 = vmatprep.subr.bf16.mxu1 %v1768_v41  ;;  %v1855_v40 = vld [vmem:[%s2183_s21 + $0x374] ss:$8 sps:$4 sm:$0xff]   ;;  %v1850_v41 = vld [vmem:[%s2183_s21 + $0x170] ss:$8 sps:$4 sm:$0xff]  }
  0x80   : > { %1160 = vmatprep.subr.bf16.mxu0 %v1770_v42  ;;  %v1853_v42 = vld [vmem:[%s2183_s21 + $0x370] ss:$8 sps:$4 sm:$0xff]  }
  0x82   : > { %1079 = vmatpush1.bf16.msra.mxu1 %v1772_v43  ;;  %v1858_v43 = vld [vmem:[%s2183_s21 + $0x184] ss:$8 sps:$4 sm:$0xff]  }
  0x83   : > { %1161 = vmatpush1.bf16.msra.mxu0 %v1773_v44  ;;  %1080 = vmatprep.subr.bf16.mxu1 %v1774_v45  ;;  %v1861_v44 = vld [vmem:[%s2183_s21 + $0x384] ss:$8 sps:$4 sm:$0xff]   ;;  %v1856_v45 = vld [vmem:[%s2183_s21 + $0x180] ss:$8 sps:$4 sm:$0xff]  }
  0x84   : > { %1162 = vmatprep.subr.bf16.mxu0 %v1776_v46  ;;  %v1859_v46 = vld [vmem:[%s2183_s21 + $0x380] ss:$8 sps:$4 sm:$0xff]  }
  0x86   : > { %1081 = vmatpush1.bf16.msra.mxu1 %v1778_v48  ;;  %v1867_v48 = vld [vmem:[%s2183_s21 + $0x394] ss:$8 sps:$4 sm:$0xff]  }
  0x87   : > { %1163 = vmatpush1.bf16.msra.mxu0 %v1779_v50  ;;  %1082 = vmatprep.subr.bf16.mxu1 %v1780_v52  ;;  %v1865_v50 = vld [vmem:[%s2183_s21 + $0x390] ss:$8 sps:$4 sm:$0xff]   ;;  %v1873_v52 = vld [vmem:[%s2183_s21 + $0x3a4] ss:$8 sps:$4 sm:$0xff]  }
  0x88   : > { %1164 = vmatprep.subr.bf16.mxu0 %v1782_v53  ;;  %v1868_v53 = vld [vmem:[%s2183_s21 + $0x1a0] ss:$8 sps:$4 sm:$0xff]  }
  0x8a   : > { %1083 = vmatpush1.bf16.msra.mxu1 %v1784_v55  ;;  %v1876_v55 = vld [vmem:[%s2183_s21 + $0x1b4] ss:$8 sps:$4 sm:$0xff]  }
  0x8b   : > { %1165 = vmatpush1.bf16.msra.mxu0 %v1785_v56  ;;  %1084 = vmatprep.subr.bf16.mxu1 %v1786_v57  ;;  %v1879_v56 = vld [vmem:[%s2183_s21 + $0x3b4] ss:$8 sps:$4 sm:$0xff]   ;;  %v1874_v57 = vld [vmem:[%s2183_s21 + $0x1b0] ss:$8 sps:$4 sm:$0xff]  }
  0x8c   : > { %1166 = vmatprep.subr.bf16.mxu0 %v1788_v58  ;;  %v1877_v58 = vld [vmem:[%s2183_s21 + $0x3b0] ss:$8 sps:$4 sm:$0xff]  }
  0x8e   : > { %1085 = vmatpush1.bf16.msra.mxu1 %v1790_v59  ;;  %v1882_v59 = vld [vmem:[%s2183_s21 + $0x1c4] ss:$8 sps:$4 sm:$0xff]  }
  0x8f   : > { %1167 = vmatpush1.bf16.msra.mxu0 %v1791_v60  ;;  %1086 = vmatprep.subr.bf16.mxu1 %v1792_v61  ;;  %v1885_v60 = vld [vmem:[%s2183_s21 + $0x3c4] ss:$8 sps:$4 sm:$0xff]   ;;  %v1880_v61 = vld [vmem:[%s2183_s21 + $0x1c0] ss:$8 sps:$4 sm:$0xff]  }
  0x90   : > { %1168 = vmatprep.subr.bf16.mxu0 %v1794_v62  ;;  %v1883_v62 = vld [vmem:[%s2183_s21 + $0x3c0] ss:$8 sps:$4 sm:$0xff]  }
  0x92   : > { %1087 = vmatpush1.bf16.msra.mxu1 %v1796_v63  ;;  %v1888_v63 = vld [vmem:[%s2183_s21 + $0x1d4] ss:$8 sps:$4 sm:$0xff]  }
  0x93   : > { %1169 = vmatpush1.bf16.msra.mxu0 %v1797_v0  ;;  %1088 = vmatprep.subr.bf16.mxu1 %v1798_v1  ;;  %v1891_v0 = vld [vmem:[%s2183_s21 + $0x3d4] ss:$8 sps:$4 sm:$0xff]   ;;  %v1886_v1 = vld [vmem:[%s2183_s21 + $0x1d0] ss:$8 sps:$4 sm:$0xff]  }
  0x94   : > { %1170 = vmatprep.subr.bf16.mxu0 %v1800_v2  ;;  %v1889_v2 = vld [vmem:[%s2183_s21 + $0x3d0] ss:$8 sps:$4 sm:$0xff]  }
  0x96   : > { %1089 = vmatpush1.bf16.msra.mxu1 %v1802_v3  ;;  %v1894_v3 = vld [vmem:[%s2183_s21 + $0x1e4] ss:$8 sps:$4 sm:$0xff]  }
  0x97   : > { %1171 = vmatpush1.bf16.msra.mxu0 %v1803_v4  ;;  %1099 = vmatprep.subr.bf16.mxu1 %v1808_v5  ;;  %v1897_v4 = vld [vmem:[%s2183_s21 + $0x3e4] ss:$8 sps:$4 sm:$0xff]   ;;  %v1892_v5 = vld [vmem:[%s2183_s21 + $0x1e0] ss:$8 sps:$4 sm:$0xff]  }
  0x98   : > { %1181 = vmatprep.subr.bf16.mxu0 %v1813_v6  ;;  %v1895_v6 = vld [vmem:[%s2183_s21 + $0x3e0] ss:$8 sps:$4 sm:$0xff]  }
  0x99   : > { %1091 = vmatmul.mubr.bf16.vlgmr.msra.gmra.mrb[0].mxu1 %v1471_v7  ;;  %v1900_v7 = vld [vmem:[%s2183_s21 + $0x1f4] ss:$8 sps:$4 sm:$0xff]  }
  0x9a   : > { %1173 = vmatmul.mubr.bf16.vlgmr.msra.gmra.mrb[0].mxu0 %v1475_v8  ;;  %1100 = vmatpush1.bf16.msra.mxu1 %v1806_v9  ;;  %v1903_v8 = vld [vmem:[%s2183_s21 + $0x3f4] ss:$8 sps:$4 sm:$0xff]   ;;  %v1898_v9 = vld [vmem:[%s2183_s21 + $0x1f0] ss:$8 sps:$4 sm:$0xff]  }
  0x9b   : > { %1182 = vmatpush1.bf16.msra.mxu0 %v1811_v10  ;;  %1101 = vmatprep.subr.bf16.mxu1 %v1816_v11  ;;  %v1901_v10 = vld [vmem:[%s2183_s21 + $0x3f0] ss:$8 sps:$4 sm:$0xff]   ;;  %v1908_v11 = vld [vmem:[%s2189_s25 + $0x40] sm:$0xff]  }
  0x9c   : > { %1183 = vmatprep.subr.bf16.mxu0 %v1819_v12  ;;  %1131 = vmatprep.mubr.bf16.mxu1 %v1474_v37  ;;  %v1473_v12 = vcombine.low %v2303_v34, %v2303_v34 }
  0x9d   : > { %1213 = vmatprep.mubr.bf16.mxu0 %v1478_v38 }
  0x9e   : > { %1102 = vmatpush1.bf16.msra.mxu1 %v1814_v13  ;;  %v1477_v13 = vcombine.low %v2308_v35, %v2308_v35 }
  0x9f   : > { %1184 = vmatpush1.bf16.msra.mxu0 %v1817_v14  ;;  %1103 = vmatprep.subr.bf16.mxu1 %v1822_v15  ;;  %v1909_v14 = vld [vmem:[%s2189_s25] sm:$0xff]   ;;  %v1910_v15 = vld [vmem:[%s2189_s25 + $0x48] sm:$0xff]  }
  0xa0   : > { %1185 = vmatprep.subr.bf16.mxu0 %v1825_v16  ;;  %v1911_v16 = vld [vmem:[%s2189_s25 + $0x8] sm:$0xff]  }
  0xa2   : > { %1104 = vmatpush1.bf16.msra.mxu1 %v1820_v17  ;;  %v1912_v17 = vld [vmem:[%s2189_s25 + $0x50] sm:$0xff]  }
  0xa3   : > { %1186 = vmatpush1.bf16.msra.mxu0 %v1823_v18  ;;  %1105 = vmatprep.subr.bf16.mxu1 %v1828_v19  ;;  %v1913_v18 = vld [vmem:[%s2189_s25 + $0x10] sm:$0xff]   ;;  %v1914_v19 = vld [vmem:[%s2189_s25 + $0x58] sm:$0xff]  }
  0xa4   : > { %1187 = vmatprep.subr.bf16.mxu0 %v1831_v20  ;;  %v1915_v20 = vld [vmem:[%s2189_s25 + $0x18] sm:$0xff]  }
  0xa6   : > { %1106 = vmatpush1.bf16.msra.mxu1 %v1826_v21  ;;  %v1916_v21 = vld [vmem:[%s2189_s25 + $0x60] sm:$0xff]  }
  0xa7   : > { %1188 = vmatpush1.bf16.msra.mxu0 %v1829_v22  ;;  %1107 = vmatprep.subr.bf16.mxu1 %v1834_v23  ;;  %v1917_v22 = vld [vmem:[%s2189_s25 + $0x20] sm:$0xff]   ;;  %v1918_v23 = vld [vmem:[%s2189_s25 + $0x68] sm:$0xff]  }
  0xa8   : > { %1189 = vmatprep.subr.bf16.mxu0 %v1837_v24  ;;  %v1919_v24 = vld [vmem:[%s2189_s25 + $0x28] sm:$0xff]  }
  0xaa   : > { %1108 = vmatpush1.bf16.msra.mxu1 %v1832_v25  ;;  %v1920_v25 = vld [vmem:[%s2189_s25 + $0x70] sm:$0xff]  }
  0xab   : > { %1190 = vmatpush1.bf16.msra.mxu0 %v1835_v26  ;;  %1109 = vmatprep.subr.bf16.mxu1 %v1840_v27  ;;  %v1921_v26 = vld [vmem:[%s2189_s25 + $0x30] sm:$0xff]   ;;  %v1922_v27 = vld [vmem:[%s2189_s25 + $0x78] sm:$0xff]  }
  0xac   : > { %1191 = vmatprep.subr.bf16.mxu0 %v1843_v28  ;;  %v1923_v28 = vld [vmem:[%s2189_s25 + $0x38] sm:$0xff]  }
  0xae   : > { %1110 = vmatpush1.bf16.msra.mxu1 %v1838_v29 }
  0xaf   : > { %1192 = vmatpush1.bf16.msra.mxu0 %v1841_v30  ;;  %1111 = vmatprep.subr.bf16.mxu1 %v1846_v31 }
  0xb0   : > { %1193 = vmatprep.subr.bf16.mxu0 %v1849_v32 }
  0xb2   : > { %1112 = vmatpush1.bf16.msra.mxu1 %v1844_v33 }
  0xb3   : > { %1194 = vmatpush1.bf16.msra.mxu0 %v1847_v36  ;;  %1113 = vmatprep.subr.bf16.mxu1 %v1852_v39 }
  0xb4   : > { %1195 = vmatprep.subr.bf16.mxu0 %v1855_v40 }
  0xb6   : > { %1114 = vmatpush1.bf16.msra.mxu1 %v1850_v41 }
  0xb7   : > { %1196 = vmatpush1.bf16.msra.mxu0 %v1853_v42  ;;  %1115 = vmatprep.subr.bf16.mxu1 %v1858_v43  ;;  %v1222_v42 = vld [vmem:[%s2394_s4] sm:$0xff] }
  0xb8   : > { %1197 = vmatprep.subr.bf16.mxu0 %v1861_v44 }
  0xba   : > { %1116 = vmatpush1.bf16.msra.mxu1 %v1856_v45 }
  0xbb   : > { %1198 = vmatpush1.bf16.msra.mxu0 %v1859_v46  ;;  %1117 = vmatprep.subr.bf16.mxu1 %v1864_v47 }
  0xbc   : > { %1199 = vmatprep.subr.bf16.mxu0 %v1867_v48 }
  0xbe   : > { %1118 = vmatpush1.bf16.msra.mxu1 %v1862_v49 }
  0xbf   : > { %1200 = vmatpush1.bf16.msra.mxu0 %v1865_v50  ;;  %1119 = vmatprep.subr.bf16.mxu1 %v1870_v51 }
  0xc0   : > { %1201 = vmatprep.subr.bf16.mxu0 %v1873_v52 }
  0xc2   : > { %1120 = vmatpush1.bf16.msra.mxu1 %v1868_v53 }
  0xc3   : > { %1202 = vmatpush1.bf16.msra.mxu0 %v1871_v54  ;;  %1121 = vmatprep.subr.bf16.mxu1 %v1876_v55 }
  0xc4   : > { %1203 = vmatprep.subr.bf16.mxu0 %v1879_v56 }
  0xc6   : > { %1122 = vmatpush1.bf16.msra.mxu1 %v1874_v57 }
  0xc7   : > { %1204 = vmatpush1.bf16.msra.mxu0 %v1877_v58  ;;  %1123 = vmatprep.subr.bf16.mxu1 %v1882_v59 }
  0xc8   : > { %1205 = vmatprep.subr.bf16.mxu0 %v1885_v60 }
  0xca   : > { %1124 = vmatpush1.bf16.msra.mxu1 %v1880_v61 }
  0xcb   : > { %1206 = vmatpush1.bf16.msra.mxu0 %v1883_v62  ;;  %1125 = vmatprep.subr.bf16.mxu1 %v1888_v63 }
  0xcc   : > { %1207 = vmatprep.subr.bf16.mxu0 %v1891_v0 }
  0xce   : > { %1126 = vmatpush1.bf16.msra.mxu1 %v1886_v1 }
  0xcf   : > { %1208 = vmatpush1.bf16.msra.mxu0 %v1889_v2  ;;  %1127 = vmatprep.subr.bf16.mxu1 %v1894_v3 }
  0xd0   : > { %1209 = vmatprep.subr.bf16.mxu0 %v1897_v4 }
  0xd2   : > { %1128 = vmatpush1.bf16.msra.mxu1 %v1892_v5 }
  0xd3   : > { %1210 = vmatpush1.bf16.msra.mxu0 %v1895_v6  ;;  %1129 = vmatprep.subr.bf16.mxu1 %v1900_v7 }
  0xd4   : > { %1211 = vmatprep.subr.bf16.mxu0 %v1903_v8 }
  0xd6   : > { %1130 = vmatpush1.bf16.msra.mxu1 %v1898_v9 }
  0xd7   : > { %1212 = vmatpush1.bf16.msra.mxu0 %v1901_v10  ;;  %1627 = vmatprep.subr.bf16.mxu1 %v1908_v11 }
  0xd9   : > { %1132 = vmatmul.mubr.bf16.vlgmr.msra.gmra.mrb[0].mxu1 %v1473_v12 }
  0xda   : > { %1214 = vmatmul.mubr.bf16.vlgmr.msra.gmra.mrb[0].mxu0 %v1477_v13  ;;  %1628 = vmatpush3.bf16.msra.mxu1 %v1909_v14 }
  0xdb   : > { %1629 = vmatprep.subr.bf16.mxu1 %v1910_v15 }
  0xde   : > { %1630 = vmatpush3.bf16.msra.mxu1 %v1911_v16 }
  0xdf   : > { %1631 = vmatprep.subr.bf16.mxu1 %v1912_v17 }
  0xe2   : > { %1632 = vmatpush3.bf16.msra.mxu1 %v1913_v18 }
  0xe3   : > { %1633 = vmatprep.subr.bf16.mxu1 %v1914_v19 }
  0xe6   : > { %1634 = vmatpush3.bf16.msra.mxu1 %v1915_v20 }
  0xe7   : > { %1635 = vmatprep.subr.bf16.mxu1 %v1916_v21 }
  0xea   : > { %1636 = vmatpush3.bf16.msra.mxu1 %v1917_v22 }
  0xeb   : > { %1637 = vmatprep.subr.bf16.mxu1 %v1918_v23 }
  0xee   : > { %1638 = vmatpush3.bf16.msra.mxu1 %v1919_v24 }
  0xef   : > { %1639 = vmatprep.subr.bf16.mxu1 %v1920_v25 }
  0xf2   : > { %1640 = vmatpush3.bf16.msra.mxu1 %v1921_v26 }
  0xf3   : > { %1641 = vmatprep.subr.bf16.mxu1 %v1922_v27 }
  0xf6   : > { %1642 = vmatpush3.bf16.msra.mxu1 %v1923_v28 }
 0x1ac   : > { %v1133_v29 = vpop.f32.mrb[0].mxu1 }
 0x1ad   : > { %v1215_v30 = vpop.f32.mrb[0].mxu0  ;;  %v1135_v32 = vpop.f32.mrb[1].mxu1 }
 0x1ae   : > { %v1649_v31 = vadd.f32 %v1215_v30, %v1133_v29  ;;  %v1217_v33 = vpop.f32.mrb[1].mxu0  ;;  %v1137_v35 = vpop.f32.mrb[2].mxu1 }
 0x1af   : > { %v1650_v34 = vadd.f32 %v1217_v33, %v1135_v32  ;;  %v1219_v36 = vpop.f32.mrb[2].mxu0  ;;  %v1138_v37 = vpop.f32.mrb[3].mxu1 }
 0x1b0   : > { %v1220_v38 = vpop.f32.mrb[3].mxu0  ;;  %v1223_v40 = vpack.c.bf16 %v1649_v31, %v1649_v31 }
 0x1b1   : > { %v1224_v39 = vpack.c.bf16 %v1650_v34, %v1650_v34 }
 0x1b3   : > { %1385 = vmatprep.mubr.bf16.mxu1 %v1224_v39 }
 0x1b4   : > { %1386 = vmatmul.mubr.bf16.vlgmr.msra.gmra.mrb[4].mxu1 %v1223_v40 }
 0x287   : > { %v1643_v41 = vpop.f32.mrb[4].mxu1 }
 0x288   : > { %v1644_v43 = vpop.f32.mrb[5].mxu1 }
 0x289   : > { %v1645_v44 = vadd.f32 %v1644_v43, %v1643_v41  ;;  %v1646_v45 = vpop.f32.mrb[6].mxu1 }
 0x28a   : > { %v1647_v46 = vpop.f32.mrb[7].mxu1 }
 0x28b   : > { %v1393_v47 = vadd.f32 %v1645_v44, %v1222_v42 }
 0x28d   : > { %1394 = vst [vmem:[%s2394_s4] sm:$0xff] %v1393_v47 }
 0x28e PF: > { %p17_p10 = scmp.ge.s32.totalorder %s2076_s20, 4   ;;  %s2400_s15 = smov %s2014_s16 }
 0x28f   : > { %s2401_s16 = smov %s2018_s17  ;;  %s2402_s17 = smov %s2086_s23 }
 0x290   : > { %s2403_s18 = smov %s2076_s20  ;;  %19 = sbr.rel (!%p17_p10) target bundleno = 5 (0x5), region = 89 }
 0x297   :  { %1406 = vsyncpa [#allocation3], 1 }
 0x298   :  { %1408 = vsyncpa [#allocation3 + $0x1], 1 }
 0x299   :  { %1409 = vsyncpa [#allocation5], 1 }
 0x29a   :  { %1411 = vsyncpa [#allocation5 + $0x1], 1 }

</bundles_post_ra>
